<compile_context>
chip_gen: v5e
topology: v5e:2x2
jax: 0.10.0
libtpu: 0.0.40
codegen_flags: <defaults>
</compile_context>

<pallas_src>
import jax
import jax.numpy as jnp
from jax.experimental import pallas as pl
from jax.experimental.pallas import tpu as pltpu


def _copy_kernel(x_ref, o_ref):
    # Pure pass-through of the current lane-dense tile.
    o_ref[...] = x_ref[...]


def _choose_layout(n_elems, itemsize):
    """Pick a lane-dense 2-D view (rows, lane) and a VMEM-safe block row count."""
    target_block_bytes = 2 * 1024 * 1024  # ~2 MiB/block -> 8 MiB double-buffered
    for lane in (512, 256, 128):
        if n_elems % lane == 0:
            rows = n_elems // lane
            target_rows = max(8, target_block_bytes // (lane * itemsize))
            target_rows = (target_rows // 8) * 8  # sublane multiple of 8
            block_rows = rows if rows <= target_rows else target_rows
            return lane, rows, block_rows
    # Fallback: total element count not a multiple of 128 -> single full-extent
    # block (block dims equal to the full array dims are always legal).
    return n_elems, 1, 1


def _pallas_identity_copy(x):
    """Materialized identity: tiled, lane-dense HBM->VMEM->HBM copy of x."""
    n_elems = 1
    for d in x.shape:
        n_elems *= d
    lane, rows, block_rows = _choose_layout(n_elems, x.dtype.itemsize)

    x2d = jnp.reshape(x, (rows, lane))
    grid = (pl.cdiv(rows, block_rows),)

    y2d = pl.pallas_call(
        _copy_kernel,
        out_shape=jax.ShapeDtypeStruct((rows, lane), x.dtype),
        grid=grid,
        in_specs=[pl.BlockSpec((block_rows, lane), lambda i: (i, 0))],
        out_specs=pl.BlockSpec((block_rows, lane), lambda i: (i, 0)),
        compiler_params=pltpu.CompilerParams(
            dimension_semantics=("parallel",),
        ),
    )(x2d)
    return jnp.reshape(y2d, x.shape)


_pallas_identity_copy_jit = jax.jit(_pallas_identity_copy)


def decoder_forward(x, state=None, materialize=False):
    """Pallas equivalent of Decoder.forward(x, state=None) -> x.

    By default this is a true zero-cost identity (returns x, no kernel, no HBM
    traffic). Set materialize=True to force a fresh buffer via the optimized
    Pallas copy kernel.
    """
    del state  # ignored, matching the reference module
    if not materialize:
        return x
    return _pallas_identity_copy_jit(x)


class Decoder:
    """Mirror of the PyTorch Decoder: stores feature sizes, identity forward."""

    def __init__(self, in_features, out_features):
        self.in_features = in_features
        self.out_features = out_features
        # No parameters: the reference module defines none.

    def __call__(self, x, state=None, materialize=False):
        return decoder_forward(x, state, materialize=materialize)


class DummyDecoder(Decoder):
    """Mirror of the PyTorch DummyDecoder: same identity forward."""

    def __init__(self, in_features, out_features):
        super().__init__(in_features, out_features)


if __name__ == "__main__":
    key = jax.random.PRNGKey(0)
    batch, seq, hidden = 2, 8, 32
    x = jax.random.normal(key, (batch, seq, hidden), dtype=jnp.float32)

    dec = DummyDecoder(in_features=hidden, out_features=hidden)

    # Default (production) path: zero-cost identity, no kernel launched.
    y = dec(x)

    # Materialized path: exercises the optimized Pallas copy kernel on TPU.
    y_kernel = dec(x, materialize=True)

    y, y_kernel = jax.block_until_ready((y, y_kernel))

    assert y.shape == x.shape and y.dtype == x.dtype
    assert y_kernel.shape == x.shape and y_kernel.dtype == x.dtype
    assert bool(jnp.array_equal(y, x))
    assert bool(jnp.array_equal(y_kernel, x))
    print("KERNEL_OK")
</pallas_src>

<mosaic_0001>
module attributes {stable_mosaic.version = 11 : i64} {
  func.func @_copy_kernel(%arg0: i32, %arg1: memref<1x512xf32, #tpu.memory_space<vmem>>, %arg2: memref<1x512xf32, #tpu.memory_space<vmem>>) attributes {dimension_semantics = [#tpu.dimension_semantics<parallel>], iteration_bounds = array<i64: 1>, scalar_prefetch = 0 : i64, scratch_operands = 0 : i64, tpu.core_type = #tpu.core_type<tc>, window_params = [{transform_indices = @transform_0, window_bounds = array<i64: 1, 512>}, {transform_indices = @transform_1, window_bounds = array<i64: 1, 512>}]} {
    %c0 = arith.constant 0 : index
    %c0_0 = arith.constant 0 : index
    %0 = vector.load %arg1[%c0, %c0_0] : memref<1x512xf32, #tpu.memory_space<vmem>>, vector<1x512xf32>
    %c0_1 = arith.constant 0 : index
    %c0_2 = arith.constant 0 : index
    %1 = vector.load %arg2[%c0_1, %c0_2] : memref<1x512xf32, #tpu.memory_space<vmem>>, vector<1x512xf32>
    tpu.vector_store %arg2[%c0_1, %c0_2], %0 {strides = array<i32>} : memref<1x512xf32, #tpu.memory_space<vmem>>, vector<1x512xf32>,
    return
  }
  func.func @transform_0(%arg0: i32) -> (i32, i32) {
    %c0_i32 = arith.constant 0 : i32
    %c0_i32_0 = arith.constant 0 : i32
    return %arg0, %c0_i32 : i32, i32
  }
  func.func @transform_1(%arg0: i32) -> (i32, i32) {
    %c0_i32 = arith.constant 0 : i32
    %c0_i32_0 = arith.constant 0 : i32
    return %arg0, %c0_i32 : i32, i32
  }
}

</mosaic_0001>

<bundles_post_ra>
// kernel: _pallas_identity_copy.1
= control target key start
LH: loop header
LB: loop body
LE: loop exit
PB: predicated region body
PF: predicated region fallthrough
CT: control target
= control target key end

     0   :  { %v9_v0 = vlaneseq  ;;  %s34_s0 = inlined_call_operand.vmem [shape: f32[1,512], index: 0, kind: input, shape index: {}]   ;;  %s35_s1 = inlined_call_operand.vmem [shape: f32[1,512], index: 1, kind: output, shape index: {}]  }
   0x1   :  { %v8_v1 = vld [vmem:[%s34_s0] sm:$0xf] }
   0x2   :  { %vm11_vm0 = vcmp.lt.s32.totalorder %v9_v0, 512 }
   0x3   :  { %13 = vst.msk [vmem:[%s35_s1] sm:$0xf] %vm11_vm0, %v8_v1 }

</bundles_post_ra>
